<compile_context>
chip_gen: v7x
topology: tpu7x:2x2x1
jax: 0.10.0
libtpu: 0.0.40
codegen_flags: <defaults>
</compile_context>

<pallas_src>
from functools import partial

import jax
import jax.numpy as jnp
from jax.experimental import pallas as pl
from jax.experimental.pallas import tpu as pltpu


# ----------------------------------------------------------------------------
# Kernels
# ----------------------------------------------------------------------------

def _gate_from_pooled(pooled, w1t_ref, b1_ref, w2_ref, b2_ref):
    """pooled: (C, 1) f32  ->  sigmoid gate (C, 1) f32 (all VPU/XLU, no MXU)."""
    # 1x1 conv #1: z[r] = sum_c w1[r,c] * pooled[c] + b1[r]
    #   (C,R) * (C,1) -> (C,R), sublane-reduce -> (1,R)
    z = jnp.sum(w1t_ref[...] * pooled, axis=0, keepdims=True) + b1_ref[...]
    z = z * jax.nn.sigmoid(z)                                   # SiLU, (1, R)
    # 1x1 conv #2: s[c] = sum_r w2[c,r] * z[r] + b2[c]
    #   (C,R) * (1,R) -> (C,R), lane-reduce -> (C,1)
    s = jnp.sum(w2_ref[...] * z, axis=1, keepdims=True) + b2_ref[...]
    return jax.nn.sigmoid(s)                                    # (C, 1) f32


def _se_fused_kernel(x_ref, w1t_ref, b1_ref, w2_ref, b2_ref, o_ref, *, inv_hw):
    """Single pass: whole (C, HWp) image block resident in VMEM."""
    x = x_ref[0]                                                # (C, HWp) native dtype
    # Global average pool; accumulate in f32 on the reduce path only
    # (padded lanes are zero, divide by the true H*W).
    pooled = jnp.sum(x, axis=1, keepdims=True, dtype=jnp.float32) * inv_hw
    gate = _gate_from_pooled(pooled, w1t_ref, b1_ref, w2_ref, b2_ref)
    # Cast the tiny (C,1) gate, not the (C,HW) tile.
    o_ref[0] = x * gate.astype(o_ref.dtype)


def _se_gate_kernel(x_ref, w1t_ref, b1_ref, w2_ref, b2_ref, g_ref, acc_ref,
                    *, inv_hw):
    """Tiled fallback, pass 1: accumulate pooled sum over HW tiles, emit gate."""
    t = pl.program_id(1)

    @pl.when(t == 0)
    def _():
        acc_ref[...] = jnp.zeros_like(acc_ref)

    acc_ref[...] += jnp.sum(x_ref[0], axis=1, keepdims=True, dtype=jnp.float32)

    @pl.when(t == pl.num_programs(1) - 1)
    def _():
        pooled = acc_ref[...] * inv_hw                          # (C, 1) f32
        g_ref[0] = _gate_from_pooled(pooled, w1t_ref, b1_ref, w2_ref, b2_ref)


def _se_scale_kernel(x_ref, g_ref, o_ref):
    """Tiled fallback, pass 2: o = x * gate, lane-dense tiles."""
    o_ref[0] = x_ref[0] * g_ref[0].astype(o_ref.dtype)


# ----------------------------------------------------------------------------
# Wrapper
# ----------------------------------------------------------------------------

def _round_up(n, m):
    return ((n + m - 1) // m) * m


def _vmem_budget_bytes():
    """~3/4 of physical VMEM (v5e/v6e: 96 MiB, v7x: 48 MiB); safe default 48 MiB."""
    cap = 64 * 1024 * 1024
    try:
        info = pltpu.get_tpu_info()
        cap = int(getattr(info, "vmem_capacity_bytes", cap))
    except Exception:
        pass
    return (cap * 3) // 4


def _pad_hw(x_flat, hwp):
    hw = x_flat.shape[-1]
    if hwp == hw:
        return x_flat
    return jnp.pad(x_flat, ((0, 0), (0, 0), (0, hwp - hw)))


def squeeze_excitation(x, w1, b1, w2, b2, *, hw_block=None):
    """x: (N, C, H, W).  w1: (R, C), b1: (R,), w2: (C, R), b2: (C,).

    hw_block=None picks the layout automatically (whole-image block when it
    fits the VMEM budget, otherwise an HW-tiled two-pass pipeline).  Passing an
    explicit hw_block forces the tiled path with that (128-rounded) tile.
    """
    N, C, H, W = x.shape
    R = w1.shape[0]
    HW = H * W
    itemsize = jnp.dtype(x.dtype).itemsize

    budget = int(_vmem_budget_bytes())
    hw128 = _round_up(HW, 128)            # lane-dense spatial extent

    # Weights in the layouts the kernel wants (all tiny).
    w1t = jnp.asarray(w1, jnp.float32).T          # (C, R)
    b1_row = jnp.asarray(b1, jnp.float32).reshape(1, R)
    w2f = jnp.asarray(w2, jnp.float32)            # (C, R)
    b2_col = jnp.asarray(b2, jnp.float32).reshape(C, 1)

    # VMEM needed by the fused path: double-buffered input + output image
    # blocks, (double-buffered) weights, plus slack for internal scratch.
    weight_bytes = 4 * (2 * C * R + R + C) * 4
    whole_need = 4 * C * hw128 * itemsize + weight_bytes + (2 << 20)

    if hw_block is None and whole_need <= budget:
        # ------------------------- fused single pass -------------------------
        HWp = hw128
        x_flat = _pad_hw(x.reshape(N, C, HW), HWp)
        out_flat = pl.pallas_call(
            partial(_se_fused_kernel, inv_hw=1.0 / HW),
            out_shape=jax.ShapeDtypeStruct((N, C, HWp), x.dtype),
            grid_spec=pltpu.PrefetchScalarGridSpec(
                num_scalar_prefetch=0,
                grid=(N,),
                in_specs=[
                    pl.BlockSpec((1, C, HWp), lambda b: (b, 0, 0)),
                    pl.BlockSpec((C, R), lambda b: (0, 0)),
                    pl.BlockSpec((1, R), lambda b: (0, 0)),
                    pl.BlockSpec((C, R), lambda b: (0, 0)),
                    pl.BlockSpec((C, 1), lambda b: (0, 0)),
                ],
                out_specs=pl.BlockSpec((1, C, HWp), lambda b: (b, 0, 0)),
            ),
            compiler_params=pltpu.CompilerParams(
                dimension_semantics=("parallel",),
                vmem_limit_bytes=budget),
        )(x_flat, w1t, b1_row, w2f, b2_col)
        return out_flat[:, :, :HW].reshape(N, C, H, W)

    # --------------------- tiled two-pass fallback ---------------------------
    if hw_block is None:
        lanes = max(128, (budget // (6 * C * itemsize)) // 128 * 128)
    else:
        lanes = _round_up(int(hw_block), 128)
    tile_hw = int(min(lanes, hw128))
    HWp = _round_up(HW, tile_hw)
    T = HWp // tile_hw

    x_flat = _pad_hw(x.reshape(N, C, HW), HWp)

    # Pass 1: per-(N, C) gate.
    gate = pl.pallas_call(
        partial(_se_gate_kernel, inv_hw=1.0 / HW),
        out_shape=jax.ShapeDtypeStruct((N, C, 1), jnp.float32),
        grid_spec=pltpu.PrefetchScalarGridSpec(
            num_scalar_prefetch=0,
            grid=(N, T),
            in_specs=[
                pl.BlockSpec((1, C, tile_hw), lambda b, t: (b, 0, t)),
                pl.BlockSpec((C, R), lambda b, t: (0, 0)),
                pl.BlockSpec((1, R), lambda b, t: (0, 0)),
                pl.BlockSpec((C, R), lambda b, t: (0, 0)),
                pl.BlockSpec((C, 1), lambda b, t: (0, 0)),
            ],
            out_specs=pl.BlockSpec((1, C, 1), lambda b, t: (b, 0, 0)),
            scratch_shapes=[pltpu.VMEM((C, 1), jnp.float32)],
        ),
        compiler_params=pltpu.CompilerParams(
            dimension_semantics=("parallel", "arbitrary"),
            vmem_limit_bytes=budget),
    )(x_flat, w1t, b1_row, w2f, b2_col)

    # Pass 2: scale x by the gate, fully parallel over (batch, HW tiles).
    out_flat = pl.pallas_call(
        _se_scale_kernel,
        out_shape=jax.ShapeDtypeStruct((N, C, HWp), x.dtype),
        grid_spec=pltpu.PrefetchScalarGridSpec(
            num_scalar_prefetch=0,
            grid=(N, T),
            in_specs=[
                pl.BlockSpec((1, C, tile_hw), lambda b, t: (b, 0, t)),
                pl.BlockSpec((1, C, 1), lambda b, t: (b, 0, 0)),
            ],
            out_specs=pl.BlockSpec((1, C, tile_hw), lambda b, t: (b, 0, t)),
        ),
        compiler_params=pltpu.CompilerParams(
            dimension_semantics=("parallel", "parallel"),
            vmem_limit_bytes=budget),
    )(x_flat, gate)

    return out_flat[:, :, :HW].reshape(N, C, H, W)


# ----------------------------------------------------------------------------
# Reference + test
# ----------------------------------------------------------------------------

def _reference(x, w1, b1, w2, b2):
    """Pure-JAX reference matching the PyTorch module exactly."""
    pooled = jnp.mean(x, axis=(2, 3))                     # (N, C)
    z = pooled @ w1.T + b1                                # (N, R)
    z = z * jax.nn.sigmoid(z)                             # SiLU
    s = jax.nn.sigmoid(z @ w2.T + b2)                     # (N, C)
    return x * s[:, :, None, None]


if __name__ == "__main__":
    # Small shapes consistent with the module: batch=2, channels=4,
    # reduced_dim=2, spatial=16x16.
    N, C, R, H, W = 2, 4, 2, 16, 16

    key = jax.random.PRNGKey(0)
    kx, k1, k2, k3, k4 = jax.random.split(key, 5)

    x = jax.random.normal(kx, (N, C, H, W), dtype=jnp.float32)
    w1 = jax.random.normal(k1, (R, C), dtype=jnp.float32) * 0.5   # Conv2d(C -> R, 1)
    b1 = jax.random.normal(k2, (R,), dtype=jnp.float32) * 0.1
    w2 = jax.random.normal(k3, (C, R), dtype=jnp.float32) * 0.5   # Conv2d(R -> C, 1)
    b2 = jax.random.normal(k4, (C,), dtype=jnp.float32) * 0.1

    ref = _reference(x, w1, b1, w2, b2)

    # Fused single-pass path (auto-selected at these shapes).
    out = squeeze_excitation(x, w1, b1, w2, b2)
    jax.block_until_ready(out)
    assert out.shape == (N, C, H, W)
    assert jnp.allclose(out, ref, atol=1e-5, rtol=1e-5), "fused path mismatch"

    # Tiled two-pass fallback path (forced) — the large-shape / v7x route.
    out_tiled = squeeze_excitation(x, w1, b1, w2, b2, hw_block=128)
    jax.block_until_ready(out_tiled)
    assert jnp.allclose(out_tiled, ref, atol=1e-5, rtol=1e-5), "tiled path mismatch"

    print("KERNEL_OK")
</pallas_src>

<mosaic_0001>
module attributes {stable_mosaic.version = 11 : i64} {
  func.func @_se_fused_kernel(%arg0: i32, %arg1: memref<1x4x256xf32, #tpu.memory_space<vmem>>, %arg2: memref<4x2xf32, #tpu.memory_space<vmem>>, %arg3: memref<1x2xf32, #tpu.memory_space<vmem>>, %arg4: memref<4x2xf32, #tpu.memory_space<vmem>>, %arg5: memref<4x1xf32, #tpu.memory_space<vmem>>, %arg6: memref<1x4x256xf32, #tpu.memory_space<vmem>>) attributes {dimension_semantics = [#tpu.dimension_semantics<parallel>], iteration_bounds = array<i64: 2>, scalar_prefetch = 0 : i64, scratch_operands = 0 : i64, tpu.core_type = #tpu.core_type<tc>, window_params = [{transform_indices = @transform_0, window_bounds = array<i64: 1, 4, 256>}, {pipeline_mode = #tpu.pipeline_mode<synchronous>, transform_indices = @transform_1, window_bounds = array<i64: 4, 2>}, {pipeline_mode = #tpu.pipeline_mode<synchronous>, transform_indices = @transform_2, window_bounds = array<i64: 1, 2>}, {pipeline_mode = #tpu.pipeline_mode<synchronous>, transform_indices = @transform_3, window_bounds = array<i64: 4, 2>}, {pipeline_mode = #tpu.pipeline_mode<synchronous>, transform_indices = @transform_4, window_bounds = array<i64: 4, 1>}, {transform_indices = @transform_5, window_bounds = array<i64: 1, 4, 256>}]} {
    %c0 = arith.constant 0 : index
    %c0_0 = arith.constant 0 : index
    %c0_1 = arith.constant 0 : index
    %0 = vector.load %arg1[%c0, %c0_0, %c0_1] : memref<1x4x256xf32, #tpu.memory_space<vmem>>, vector<1x4x256xf32>
    %1 = vector.shape_cast %0 : vector<1x4x256xf32> to vector<4x256xf32>
    %cst = arith.constant dense<0.000000e+00> : vector<4xf32>
    %2 = vector.multi_reduction <add>, %1, %cst [1] : vector<4x256xf32> to vector<4xf32>
    %3 = vector.shape_cast %2 : vector<4xf32> to vector<4x1xf32>
    %cst_2 = arith.constant 3.906250e-03 : f32
    %4 = vector.broadcast %cst_2 : f32 to vector<4x1xf32>
    %5 = arith.mulf %3, %4 : vector<4x1xf32>
    %c0_3 = arith.constant 0 : index
    %c0_4 = arith.constant 0 : index
    %6 = vector.load %arg2[%c0_3, %c0_4] : memref<4x2xf32, #tpu.memory_space<vmem>>, vector<4x2xf32>
    %7 = vector.broadcast %5 : vector<4x1xf32> to vector<4x2xf32>
    %8 = arith.mulf %6, %7 : vector<4x2xf32>
    %cst_5 = arith.constant dense<0.000000e+00> : vector<2xf32>
    %9 = vector.multi_reduction <add>, %8, %cst_5 [0] : vector<4x2xf32> to vector<2xf32>
    %10 = vector.shape_cast %9 : vector<2xf32> to vector<1x2xf32>
    %c0_6 = arith.constant 0 : index
    %c0_7 = arith.constant 0 : index
    %11 = vector.load %arg3[%c0_6, %c0_7] : memref<1x2xf32, #tpu.memory_space<vmem>>, vector<1x2xf32>
    %12 = arith.addf %10, %11 : vector<1x2xf32>
    %13 = arith.negf %12 : vector<1x2xf32>
    %14 = math.exp %13 : vector<1x2xf32>
    %cst_8 = arith.constant 1.000000e+00 : f32
    %15 = vector.broadcast %cst_8 : f32 to vector<1x2xf32>
    %16 = arith.addf %15, %14 : vector<1x2xf32>
    %17 = arith.divf %15, %16 : vector<1x2xf32>
    %18 = arith.mulf %12, %17 : vector<1x2xf32>
    %c0_9 = arith.constant 0 : index
    %c0_10 = arith.constant 0 : index
    %19 = vector.load %arg4[%c0_9, %c0_10] : memref<4x2xf32, #tpu.memory_space<vmem>>, vector<4x2xf32>
    %20 = vector.broadcast %18 : vector<1x2xf32> to vector<4x2xf32>
    %21 = arith.mulf %19, %20 : vector<4x2xf32>
    %cst_11 = arith.constant dense<0.000000e+00> : vector<4xf32>
    %22 = vector.multi_reduction <add>, %21, %cst_11 [1] : vector<4x2xf32> to vector<4xf32>
    %23 = vector.shape_cast %22 : vector<4xf32> to vector<4x1xf32>
    %c0_12 = arith.constant 0 : index
    %c0_13 = arith.constant 0 : index
    %24 = vector.load %arg5[%c0_12, %c0_13] : memref<4x1xf32, #tpu.memory_space<vmem>>, vector<4x1xf32>
    %25 = arith.addf %23, %24 : vector<4x1xf32>
    %26 = arith.negf %25 : vector<4x1xf32>
    %27 = math.exp %26 : vector<4x1xf32>
    %cst_14 = arith.constant 1.000000e+00 : f32
    %28 = vector.broadcast %cst_14 : f32 to vector<4x1xf32>
    %29 = arith.addf %28, %27 : vector<4x1xf32>
    %30 = arith.divf %28, %29 : vector<4x1xf32>
    %31 = vector.broadcast %30 : vector<4x1xf32> to vector<4x256xf32>
    %32 = arith.mulf %1, %31 : vector<4x256xf32>
    %c0_15 = arith.constant 0 : index
    %c0_16 = arith.constant 0 : index
    %c0_17 = arith.constant 0 : index
    %33 = vector.load %arg6[%c0_15, %c0_16, %c0_17] : memref<1x4x256xf32, #tpu.memory_space<vmem>>, vector<1x4x256xf32>
    %34 = vector.shape_cast %33 : vector<1x4x256xf32> to vector<4x256xf32>
    %35 = vector.shape_cast %32 : vector<4x256xf32> to vector<1x4x256xf32>
    tpu.vector_store %arg6[%c0_15, %c0_16, %c0_17], %35 {strides = array<i32>} : memref<1x4x256xf32, #tpu.memory_space<vmem>>, vector<1x4x256xf32>,
    return
  }
  func.func @transform_0(%arg0: i32) -> (i32, i32, i32) {
    %c0_i32 = arith.constant 0 : i32
    %c0_i32_0 = arith.constant 0 : i32
    %c0_i32_1 = arith.constant 0 : i32
    return %arg0, %c0_i32, %c0_i32_0 : i32, i32, i32
  }
  func.func @transform_1(%arg0: i32) -> (i32, i32) {
    %c0_i32 = arith.constant 0 : i32
    %c0_i32_0 = arith.constant 0 : i32
    %c0_i32_1 = arith.constant 0 : i32
    return %c0_i32, %c0_i32_0 : i32, i32
  }
  func.func @transform_2(%arg0: i32) -> (i32, i32) {
    %c0_i32 = arith.constant 0 : i32
    %c0_i32_0 = arith.constant 0 : i32
    %c0_i32_1 = arith.constant 0 : i32
    return %c0_i32, %c0_i32_0 : i32, i32
  }
  func.func @transform_3(%arg0: i32) -> (i32, i32) {
    %c0_i32 = arith.constant 0 : i32
    %c0_i32_0 = arith.constant 0 : i32
    %c0_i32_1 = arith.constant 0 : i32
    return %c0_i32, %c0_i32_0 : i32, i32
  }
  func.func @transform_4(%arg0: i32) -> (i32, i32) {
    %c0_i32 = arith.constant 0 : i32
    %c0_i32_0 = arith.constant 0 : i32
    %c0_i32_1 = arith.constant 0 : i32
    return %c0_i32, %c0_i32_0 : i32, i32
  }
  func.func @transform_5(%arg0: i32) -> (i32, i32, i32) {
    %c0_i32 = arith.constant 0 : i32
    %c0_i32_0 = arith.constant 0 : i32
    %c0_i32_1 = arith.constant 0 : i32
    return %arg0, %c0_i32, %c0_i32_0 : i32, i32, i32
  }
}

</mosaic_0001>

<bundles_post_ra>
// kernel: tpu_custom_call.1
= control target key start
LH: loop header
LB: loop body
LE: loop exit
PB: predicated region body
PF: predicated region fallthrough
CT: control target
= control target key end

     0   :  { %10 = vsyncpa [#allocation3], 0  ;;  %s637_s0 = inlined_call_operand.vmem [shape: f32[2,4,256], index: 0, kind: input, shape index: {}]   ;;  %s638_s1 = inlined_call_operand.vmem [shape: f32[4,2], index: 1, kind: input, shape index: {}]   ;;  %s639_s2 = inlined_call_operand.vmem [shape: f32[1,2], index: 2, kind: input, shape index: {}]   ;;  %s640_s3 = inlined_call_operand.vmem [shape: f32[4,2], index: 3, kind: input, shape index: {}]   ;;  %s641_s4 = inlined_call_operand.vmem [shape: f32[4,1], index: 4, kind: input, shape index: {}]   ;;  %s642_s5 = inlined_call_operand.hbm [shape: f32[2,4,256], index: 5, kind: output, shape index: {}]  }
   0x1   :  { %12 = vsyncpa [#allocation3 + $0x1], 0  ;;  %s523_s18 = smov 0   ;;  %s525_s19 = smov 0  }
   0x2   :  { %s527_s20 = smov 0   ;;  %s529_s21 = smov 0  }
   0x3 LB: > { %s544_s22 = sadd.s32 4294967295, %s488_s21   ;;  %s358_s23 = sadd.s32 4294967294, %s488_s21   ;;  %s488_s21 = sphi %s529_s21, %s648_s21   ;;  %s484_s20 = sphi %s527_s20, %s647_s20   ;;  %s480_s19 = sphi %s525_s19, %s646_s19   ;;  %s476_s18 = sphi %s523_s18, %s645_s18  }
   0x4   : > { %s548_s24 = sadd.s32 1, %s488_s21   ;;  %s135_s25 = sadd.s32 1, %s484_s20 }
   0x5   : > { %s132_s26 = ssub.s32 %s488_s21, %s548_s24  ;;  %p145_p0 = scmp.ne.s32.totalorder %s484_s20, %s480_s19 }
   0x6   : > { %p133_p1 = scmp.eq.s32.totalorder %s132_s26, 0  ;;  %p146_p2 = scmp.eq.s32.totalorder %s544_s22, 1 }
   0x7   : > { %p151_p3 = scmp.ne.s32.totalorder %s480_s19, %s476_s18  ;;  %p152_p4 = scmp.eq.s32.totalorder %s358_s23, 1 }
   0x8   : > { %s559_s27 = scalar_select %p133_p1, %s484_s20, %s135_s25  }
   0x9   : > { %p561_p5 = por %p146_p2, %p145_p0  ;;  %p565_p6 = por %p152_p4, %p151_p3 }
   0xa   : > { %p361_p7 = scmp.ge.s32.totalorder %s488_s21, 1  ;;  %p190_p8 = scmp.lt.s32.totalorder %s488_s21, 3 }
   0xc   : > { %p191_p9 = pnand %p361_p7, %p190_p8 }
   0xd   : > { %p218_p10 = scmp.lt.s32.totalorder (!%p191_p9), %s544_s22, 1  ;;  %vm227_vm0 = vcmask (!%p191_p9), 1043456   ;;  %v234_v5 = vld [vmem:[%s638_s1] sm:$0xf] (!%p191_p9)  ;;  %vm236_vm1 = vcmask (!%p191_p9), 11264   ;;  %v254_v21 = vlaneseq (!%p191_p9)  ;;  %v490_v30 = vmov (!%p191_p9), 0  }
   0xe   : > { %194 = sbr.rel (%p191_p9) target bundleno = 541 (0x21d), region = 40  ;;  %v244_v15 = vld [vmem:[%s639_s2] sm:$0x1] (!%p191_p9)  ;;  %415 = vset.pattern.permute.xlu1 (!%p191_p9), %v490_v30  ;;  %416 = vset.pattern.permute.xlu0 (!%p191_p9), %v490_v30  ;;  %v491_v38 = vmov (!%p191_p9), 839922192   ;;  %s215_s23 = sand.u32 (!%p191_p9), 1, %s480_s19  }
   0xf   : > { %v255_v22 = vshrl.u32 (!%p191_p9), %v254_v21, 7  ;;  %v253_v26 = vld [vmem:[%s640_s3] sm:$0xf] (!%p191_p9)  ;;  %v275_v39 = vunpack.c.l.s4 (!%p191_p9), %v491_v38  ;;  %s362_s25 = sshll.u32 (!%p191_p9), %s215_s23, 3  ;;  %s373_s26 = sshll.u32 (!%p191_p9), %s544_s22, 7 }
  0x10   : > { %v262_v31 = vld [vmem:[%s641_s4] sm:$0xf] (!%p191_p9)  ;;  %s285_s10 = scalar_lea.sflag (!%p191_p9), [#allocation3], %s215_s23 }
  0x11   : > { %v256_v23 = vsub.s32 (!%p191_p9), 0, %v255_v22  ;;  %v276_v40 = vunpack.c.0.s8 (!%p191_p9), %v275_v39 }
  0x13   : > { %v279_v41 = vsub.s32 (!%p191_p9), %v276_v40, %v255_v22 }
  0x15   : > { %s219_s30 = scalar_select %p218_p10, %s544_s22, 1 }
  0x16   : > { %s492_s22 = smov [#allocation2]  }
  0x17   : > { %s372_s6 = sshll.u32 %s219_s30, 3  ;;  %s217_s30 = scalar_lea.vmem [#allocation2], %s362_s25 }
  0x18   : > { %s222_s9 = scalar_lea.vmem %s637_s0, %s372_s6  ;;  %s299_s6 = sshll.u32 %s217_s30, 4  ;;  %s597_s6 = int_to_ptr.vmem [resolvable:$true] %s299_s6 }
  0x19   : > { %v223_v0 = vld [vmem:[%s222_s9] sm:$0xff]  ;;  %s595_s9 = scalar_lea.hbm %s642_s5, %s373_s26  ;;  %s426_s11 = scalar_lea.vmem %s597_s6, 128 }
  0x1a   : > { %v225_v1 = vcombine.high %v223_v0, %v223_v0  ;;  %v228_v2 = vsel %vm227_vm0, %v223_v0, 0.0  ;;  %p427_p11 = scmp.ne.s32.totalorder %s597_s6, %s426_s11  ;;  %s430_s12 = sshll.u32 %s492_s22, 4  ;;  %s431_s12 = int_to_ptr.vmem [resolvable:$false] %s430_s12 }
  0x1b   : > { %s432_s13 = scalar_lea.vmem %s431_s12, 256  ;;  %p433_p0 = scmp.lt.s32.totalorder %s597_s6, %s431_s12 }
  0x1c   : > { %v229_v3 = vsel %vm227_vm0, %v225_v1, 0.0  ;;  %p428_p12 = pnand %p427_p11, %p561_p5  ;;  %p434_p1 = scmp.lt.s32.totalorder %s432_s13, %s426_s11 }
  0x1d   : > { %v230_v4 = vadd.f32 %v229_v3, %v228_v2 }
  0x1e   : > { %p429_p13 = pneg %p428_p12  ;;  %p435_p2 = por %p434_p1, %p433_p0 }
  0x1f   : > { %231 = vadd.xlane.f32.xlu0 %v230_v4 }
  0x20   : > { %p436_p3 = pnand %p435_p2, %p429_p13 }
  0xac   : > { %v232_v6 = vpop.xlane.xlu0 %231 }
  0xad   : > { %v233_v7 = vmul.f32 0.00390625, %v232_v6 }
  0xaf   : > { %v235_v8 = vmul.f32 %v234_v5, %v233_v7 }
  0xb1   : > { %v237_v9 = vsel %vm236_vm1, %v235_v8, 0.0 }
  0xb2   : > { %v238_v10 = vrot.slane %v237_v9, 4 }
  0xb4   : > { %v239_v11 = vadd.f32 %v238_v10, %v237_v9 }
  0xb6   : > { %v240_v12 = vrot.slane %v239_v11, 2 }
  0xb8   : > { %v241_v13 = vadd.f32 %v240_v12, %v239_v11 }
  0xba   : > { %v242_v14 = vrot.slane %v241_v13, 1 }
  0xbc   : > { %v243_v16 = vadd.f32 %v242_v14, %v241_v13 }
  0xbe   : > { %v245_v17 = vadd.f32 %v244_v15, %v243_v16 }
  0xc0   : > { %v365_v18 = vmul.f32 -1.442695, %v245_v17 }
  0xc2   : > { %418 = vpow2.f32 %v365_v18 }
  0xcc   : > { %v419_v19 = vpop.eup %418 }
  0xcd   : > { %v249_v20 = vadd.f32 1.0, %v419_v19 }
  0xcf   : > { %420 = vrcp.f32 %v249_v20 }
  0xd9   : > { %v421_v24 = vpop.eup %420 }
  0xda   : > { %v252_v25 = vmul.f32 %v421_v24, %v245_v17 }
  0xdc   : > { %v257_v27 = vrot.slane %v252_v25, %v256_v23 }
  0xde   : > { %v258_v28 = vmul.f32 %v257_v27, %v253_v26 }
  0xe0   : > { %v259_v29 = vsel %vm236_vm1, %v258_v28, 0.0 }
  0xe1   : > { %260 = vadd.xlane.f32.xlu0 %v259_v29 }
 0x16e   : > { %v261_v32 = vpop.xlane.xlu0 %260 }
 0x16f   : > { %v263_v33 = vadd.f32 %v262_v31, %v261_v32 }
 0x171   : > { %v366_v34 = vmul.f32 -1.442695, %v263_v33 }
 0x173   : > { %422 = vpow2.f32 %v366_v34 }
 0x17d   : > { %v423_v35 = vpop.eup %422 }
 0x17e   : > { %v267_v36 = vadd.f32 1.0, %v423_v35 }
 0x180   : > { %424 = vrcp.f32 %v267_v36 }
 0x18a   : > { %v425_v37 = vpop.eup %424 }
 0x18b   : > { %272 = vperm.xlu1 %415, %v425_v37  }
 0x20a   : > { %v273_v42 = vpop.permute.xlu1 %272 }
 0x20b   : > { %v280_v43 = vrot.slane %v273_v42, %v279_v41 }
 0x20d   : > { %v282_v44 = vmul.f32 %v280_v43, %v223_v0 }
 0x20f   : > { %283 = vst [vmem:[%s217_s30] sm:$0xff] %v282_v44 }
 0x210   : > { %439 = shalt.err (!%p436_p3)
}
 0x211   : > { %s440_s14 = scalar_lea.hbm %s595_s9, 128  ;;  %s444_s17 = scalar_lea.hbm %s642_s5, 256 }
 0x212   : > { %p441_p4 = scmp.ne.s32.totalorder %s595_s9, %s440_s14  ;;  %p445_p9 = scmp.lt.u32.totalorder %s595_s9, %s642_s5 }
 0x213   : > { %p446_p10 = scmp.lt.u32.totalorder %s444_s17, %s440_s14  ;;  %p448_p12 = scmp.lt.u32.totalorder %s440_s14, %s595_s9 }
 0x214   : > { %p442_p7 = pnand %p441_p4, %p561_p5 }
 0x215   : > { %p447_p11 = por %p446_p10, %p445_p9 }
 0x216   : > { %p443_p8 = pneg %p442_p7 }
 0x217   : > { %p449_p13 = por %p448_p12, %p447_p11 }
 0x219   : > { %p450_p0 = pnand %p449_p13, %p443_p8 }
 0x21b   : > { %453 = shalt.err (!%p450_p0)
}
 0x21c   : > { %374 = dma.vmem_to_hbm [thread:$0]  (%p561_p5), %s597_s6, 128, %s595_s9, %s285_s10  }
 0x21d PF: > { %p380_p1 = scmp.ge.s32.totalorder %s488_s21, 2  ;;  %s311_s26 = sand.u32 1, %s476_s18  }
 0x21e   : > { %s312_s30 = scalar_lea.sflag [#allocation3], %s311_s26 }
 0x21f   : > { %p377_p2 = pnand %p380_p1, %p565_p6 }
 0x221   : > { %471 = dma.done.wait (!%p377_p2), %s312_s30, 128  }
 0x222   : > { %473 = vsyncadd (!%p377_p2), %s312_s30, 4294967168  ;;  %p15_p3 = scmp.ge.s32.totalorder %s548_s24, 4   ;;  %s645_s18 = smov %s480_s19 }
 0x223   : > { %s646_s19 = smov %s484_s20  ;;  %s647_s20 = smov %s559_s27 }
 0x224   : > { %s648_s21 = smov %s548_s24  ;;  %17 = sbr.rel (!%p15_p3) target bundleno = 3 (0x3), region = 75 }
 0x22b   :  { %317 = vsyncpa [#allocation3], 1 }
 0x22c   :  { %319 = vsyncpa [#allocation3 + $0x1], 1 }

</bundles_post_ra>
